<compile_context>
chip_gen: v7x
topology: tpu7x:2x2x1
jax: 0.10.0
libtpu: 0.0.40
codegen_flags: <defaults>
</compile_context>

<pallas_src>
import functools

import jax
import jax.numpy as jnp
import numpy as np
from jax.experimental import pallas as pl
from jax.experimental.pallas import tpu as pltpu

MEL_BINS = 128
NUM_FEATURES = 512     # resnet18 branch of MYNET.__init__
NUM_ALL = 100          # args.num_all
TEMPERATURE = 16.0     # args.network.temperature
BN_EPS = 1e-5
NORM_EPS = 1e-12
LANE = 128


def _pad_to(n, m):
    return ((n + m - 1) // m) * m


def _choose_tiles(B, T, tile_t=None, bt=None):
    """Pick (tile_t, kt, bt): T-rows per block, #T-blocks, batch rows per block."""
    if tile_t is None:
        tile_t = 1024                         # mem-bound sweet spot (~85%+ HBM roofline)
    tile_t = max(8, (int(tile_t) // 8) * 8)   # (8,128) rule when block < full T extent
    if tile_t >= T:
        tile_t = T                            # single block == full T dim (always legal)
        kt = 1
    else:
        kt = -(-T // tile_t)                  # last block may be partial (masked in-kernel)
    if bt is None:
        if kt == 1:
            # Small-T regime: pack ~1024 rows (~512 KiB) per grid step.
            bt = min(B, max(1, 1024 // max(tile_t, 1)))
        else:
            bt = 1
    bt = max(1, min(int(bt), B))
    while B % bt:                             # keep batch blocks exact (no batch edge blocks)
        bt -= 1
    return tile_t, kt, bt


# ---------- fused: BN + repeat + 1x1conv/ReLU + GAP (+ cos/dot head) ---------- #
def _fused_kernel(t_ref, inv_ref, x_ref, scale_ref, shift_ref, wpos_ref, wneg_ref,
                  *rest, tile_t, emit_logits, normalize):
    if emit_logits:
        wt_ref, o_ref, acc_y, acc_abs = rest
    else:
        o_ref, acc_y, acc_abs = rest

    k = pl.program_id(1)                      # reduction over T-chunks (last grid axis)
    nk = pl.num_programs(1)

    @pl.when(k == 0)
    def _init():
        acc_y[...] = jnp.zeros_like(acc_y)
        acc_abs[...] = jnp.zeros_like(acc_abs)

    # Stream the block in its native dtype, upcast in-register; folded eval-mode
    # bn0 is one FMA per element.
    x = x_ref[...].astype(jnp.float32)        # (bt, 1, tile_t, 128)
    y = x[:, 0] * scale_ref[...] + shift_ref[...]          # (bt, tile_t, 128)

    t_total = t_ref[0]

    def _accumulate(vals):
        # Lane-wise partial sums per batch row (cross-lane reduce only at finalize).
        acc_y[...] += jnp.sum(vals, axis=1)                 # (bt, 128)
        acc_abs[...] += jnp.sum(jnp.abs(vals), axis=1)      # (bt, 128)

    # Pay the row mask only on the ragged tail tile.
    needs_mask = (k + 1) * tile_t > t_total

    @pl.when(jnp.logical_not(needs_mask))
    def _full_tile():
        _accumulate(y)

    @pl.when(needs_mask)
    def _tail_tile():
        row = jax.lax.broadcasted_iota(jnp.int32, (tile_t, MEL_BINS), 0) + k * tile_t
        _accumulate(jnp.where(row < t_total, y, 0.0))       # zero garbage edge rows

    @pl.when(k == nk - 1)
    def _finalize():
        inv = inv_ref[0]                                     # 1 / (T * 128)
        s_y = jnp.sum(acc_y[...], axis=-1, keepdims=True)    # (bt, 1)
        s_a = jnp.sum(acc_abs[...], axis=-1, keepdims=True)  # (bt, 1)
        s_pos = 0.5 * (s_a + s_y) * inv                      # mean of relu(y)
        s_neg = 0.5 * (s_a - s_y) * inv                      # mean of relu(-y)
        # Exact rank-1 collapse of 1x1-conv-on-replicated-channels + ReLU + GAP:
        #   mean_p relu(y_p * w_sum[c])
        #     = mean_p relu(y_p) * relu(w_sum[c]) + mean_p relu(-y_p) * relu(-w_sum[c])
        feat = s_pos * wpos_ref[...] + s_neg * wneg_ref[...]  # (bt, 512)
        if emit_logits:
            z = feat
            if normalize:                                     # F.normalize(feat)
                ss = jnp.sum(z * z, axis=-1, keepdims=True)
                z = z * jax.lax.rsqrt(jnp.maximum(ss, NORM_EPS * NORM_EPS))
            # fc weights are pre-normalized / temperature-scaled / padded in wrapper.
            o_ref[...] = jnp.dot(z, wt_ref[...], preferred_element_type=jnp.float32)
        else:
            o_ref[...] = feat


# -------------------------------- MYNET forward ------------------------------- #
def mynet_forward(x, params, mode="ft_cos", *, tile_t=None, bt=None):
    B, C, T, M = x.shape
    assert C == 1 and M == MEL_BINS

    # Fold bn0 (eval mode) into a single per-mel-bin affine.
    gamma, beta, mean, var = [a.astype(jnp.float32) for a in params["bn0"]]
    scale1 = gamma * jax.lax.rsqrt(var + BN_EPS)
    shift1 = beta - mean * scale1
    scale = scale1.reshape(1, MEL_BINS)
    shift = shift1.reshape(1, MEL_BINS)

    # Channel-collapse of the 1x1-conv stand-in on replicated channels.
    w_sum = jnp.sum(params["enc_w"].astype(jnp.float32), axis=0)   # (512,)
    w_pos = jnp.maximum(w_sum, 0.0).reshape(1, NUM_FEATURES)
    w_neg = jnp.maximum(-w_sum, 0.0).reshape(1, NUM_FEATURES)

    if mode == "encoder":
        emit_logits, normalize = False, False
    else:
        normalize = "cos" in mode
        emit_logits = normalize or ("dot" in mode)   # forward_metric falls through otherwise

    tile_t, kt, bt = _choose_tiles(B, T, tile_t, bt)
    grid = (B // bt, kt)

    args = [jnp.array([T], jnp.int32),
            jnp.array([1.0 / float(T * MEL_BINS)], jnp.float32),
            x, scale, shift, w_pos, w_neg]
    in_specs = [
        pl.BlockSpec(memory_space=pltpu.MemorySpace.SMEM),          # T
        pl.BlockSpec(memory_space=pltpu.MemorySpace.SMEM),          # 1/(T*128)
        pl.BlockSpec((bt, 1, tile_t, MEL_BINS), lambda b, k: (b, 0, k, 0)),
        pl.BlockSpec((1, MEL_BINS), lambda b, k: (0, 0)),
        pl.BlockSpec((1, MEL_BINS), lambda b, k: (0, 0)),
        pl.BlockSpec((1, NUM_FEATURES), lambda b, k: (0, 0)),
        pl.BlockSpec((1, NUM_FEATURES), lambda b, k: (0, 0)),
    ]

    if emit_logits:
        c_cls = params["fc_w"].shape[0]
        w = params["fc_w"].astype(jnp.float32)
        if normalize:                       # static param prep: normalize fc weights once
            w = w / jnp.maximum(jnp.linalg.norm(w, axis=-1, keepdims=True), NORM_EPS)
        c_out = _pad_to(c_cls, LANE)        # 100 -> 128: lane-dense unmasked stores
        wt = jnp.pad((TEMPERATURE * w).T, ((0, 0), (0, c_out - c_cls)))   # (512, c_out)
        args.append(wt)
        in_specs.append(pl.BlockSpec((NUM_FEATURES, c_out), lambda b, k: (0, 0)))
    else:
        c_out = NUM_FEATURES

    itemsize = jnp.dtype(x.dtype).itemsize
    cost = pl.CostEstimate(
        flops=int(B * T * MEL_BINS * 5
                  + (2 * B * NUM_FEATURES * c_out if emit_logits else 0)),
        transcendentals=int(B if normalize else 0),
        bytes_accessed=int(B * T * MEL_BINS * itemsize + B * c_out * 4
                           + 4 * (2 * MEL_BINS + 2 * NUM_FEATURES)
                           + (NUM_FEATURES * c_out * 4 if emit_logits else 0)),
    )

    out = pl.pallas_call(
        functools.partial(_fused_kernel, tile_t=tile_t,
                          emit_logits=emit_logits, normalize=normalize),
        out_shape=jax.ShapeDtypeStruct((B, c_out), jnp.float32),
        grid=grid,
        in_specs=in_specs,
        out_specs=pl.BlockSpec((bt, c_out), lambda b, k: (b, 0)),
        scratch_shapes=[pltpu.VMEM((bt, MEL_BINS), jnp.float32),
                        pltpu.VMEM((bt, MEL_BINS), jnp.float32)],
        compiler_params=pltpu.CompilerParams(
            dimension_semantics=("parallel", "arbitrary")),
        cost_estimate=cost,
    )(*args)

    if emit_logits:
        return out[:, :params["fc_w"].shape[0]]
    return out


# ------------------------------ reference (JAX) ------------------------------- #
def mynet_forward_ref(x, params, mode="ft_cos"):
    gamma, beta, mean, var = [a.astype(jnp.float32) for a in params["bn0"]]
    B, C, T, M = x.shape
    y = (x.astype(jnp.float32) - mean) * (gamma / jnp.sqrt(var + BN_EPS)) + beta
    xr = jnp.tile(y, (1, 3, 1, 1))                          # x.repeat(1,3,1,1)
    x_pix = jnp.transpose(xr, (0, 2, 3, 1)).reshape(B * T * M, 3)
    feat_pix = jnp.maximum(x_pix @ params["enc_w"], 0.0)    # encoder stand-in
    feat = jnp.mean(feat_pix.reshape(B, T * M, NUM_FEATURES), axis=1)
    if mode == "encoder":
        return feat
    if "cos" in mode:
        xn = feat / jnp.maximum(jnp.linalg.norm(feat, axis=-1, keepdims=True), NORM_EPS)
        wn = params["fc_w"] / jnp.maximum(
            jnp.linalg.norm(params["fc_w"], axis=-1, keepdims=True), NORM_EPS)
        return TEMPERATURE * (xn @ wn.T)
    if "dot" in mode:
        return TEMPERATURE * (feat @ params["fc_w"].T)
    return feat


def init_params(key):
    k1, k2, k3, k4, k5, k6 = jax.random.split(key, 6)
    gamma = 1.0 + 0.1 * jax.random.normal(k1, (MEL_BINS,), jnp.float32)
    beta = 0.1 * jax.random.normal(k2, (MEL_BINS,), jnp.float32)
    mean = 0.1 * jax.random.normal(k3, (MEL_BINS,), jnp.float32)
    var = 1.0 + 0.1 * jnp.abs(jax.random.normal(k4, (MEL_BINS,), jnp.float32))
    enc_w = jax.random.normal(k5, (3, NUM_FEATURES), jnp.float32) / jnp.sqrt(3.0)
    fc_w = jax.random.normal(k6, (NUM_ALL, NUM_FEATURES), jnp.float32) / jnp.sqrt(
        float(NUM_FEATURES))
    return {"bn0": (gamma, beta, mean, var), "enc_w": enc_w, "fc_w": fc_w}


if __name__ == "__main__":
    key = jax.random.PRNGKey(0)
    kx, kp = jax.random.split(key)
    params = init_params(kp)

    B, T = 2, 16
    x = jax.random.normal(kx, (B, 1, T, MEL_BINS), jnp.float32)

    out = jax.block_until_ready(mynet_forward(x, params, mode="ft_cos"))
    ref = mynet_forward_ref(x, params, mode="ft_cos")
    assert out.shape == (B, NUM_ALL), out.shape
    assert np.all(np.isfinite(np.asarray(out)))
    np.testing.assert_allclose(np.asarray(out), np.asarray(ref), rtol=2e-2, atol=2e-2)

    # Ragged T covered by a single exact block (kt == 1, tile_t == T == 13).
    x2 = jax.random.normal(jax.random.PRNGKey(1), (B, 1, 13, MEL_BINS), jnp.float32)
    out2 = jax.block_until_ready(mynet_forward(x2, params, mode="ft_cos"))
    np.testing.assert_allclose(np.asarray(out2),
                               np.asarray(mynet_forward_ref(x2, params, "ft_cos")),
                               rtol=2e-2, atol=2e-2)

    # Multi-step T reduction with a ragged tail tile: exercises the dynamic
    # in-kernel row mask on the last T block (no wrapper-side padding).
    x3 = jax.random.normal(jax.random.PRNGKey(2), (B, 1, 50, MEL_BINS), jnp.float32)
    out3 = jax.block_until_ready(mynet_forward(x3, params, mode="ft_cos", tile_t=16))
    np.testing.assert_allclose(np.asarray(out3),
                               np.asarray(mynet_forward_ref(x3, params, "ft_cos")),
                               rtol=2e-2, atol=2e-2)

    # bf16 streaming input (halves HBM traffic; upcast in-register inside the kernel).
    xb = x.astype(jnp.bfloat16)
    outb = jax.block_until_ready(mynet_forward(xb, params, mode="ft_cos"))
    np.testing.assert_allclose(np.asarray(outb),
                               np.asarray(mynet_forward_ref(xb, params, "ft_cos")),
                               rtol=2e-2, atol=2e-2)

    # Encoder and dot modes.
    feat = jax.block_until_ready(mynet_forward(x, params, mode="encoder"))
    np.testing.assert_allclose(np.asarray(feat),
                               np.asarray(mynet_forward_ref(x, params, "encoder")),
                               rtol=2e-2, atol=2e-2)
    dots = jax.block_until_ready(mynet_forward(x, params, mode="ft_dot"))
    np.testing.assert_allclose(np.asarray(dots),
                               np.asarray(mynet_forward_ref(x, params, "ft_dot")),
                               rtol=2e-2, atol=2e-2)

    print("KERNEL_OK")
</pallas_src>

<mosaic_0001>
module attributes {stable_mosaic.version = 11 : i64} {
  func.func @_fused_kernel(%arg0: i32, %arg1: i32, %arg2: memref<1xi32, #tpu.memory_space<smem>>, %arg3: memref<1xf32, #tpu.memory_space<smem>>, %arg4: memref<2x1x16x128xf32, #tpu.memory_space<vmem>>, %arg5: memref<1x128xf32, #tpu.memory_space<vmem>>, %arg6: memref<1x128xf32, #tpu.memory_space<vmem>>, %arg7: memref<1x512xf32, #tpu.memory_space<vmem>>, %arg8: memref<1x512xf32, #tpu.memory_space<vmem>>, %arg9: memref<512x128xf32, #tpu.memory_space<vmem>>, %arg10: memref<2x128xf32, #tpu.memory_space<vmem>>, %arg11: memref<2x128xf32, #tpu.memory_space<vmem>>, %arg12: memref<2x128xf32, #tpu.memory_space<vmem>>) attributes {dimension_semantics = [#tpu.dimension_semantics<parallel>, #tpu.dimension_semantics<arbitrary>], iteration_bounds = array<i64: 1, 1>, scalar_prefetch = 0 : i64, scratch_operands = 2 : i64, tpu.core_type = #tpu.core_type<tc>, window_params = [{transform_indices = @transform_0, window_bounds = array<i64: 1>}, {transform_indices = @transform_1, window_bounds = array<i64: 1>}, {transform_indices = @transform_2, window_bounds = array<i64: 2, 1, 16, 128>}, {pipeline_mode = #tpu.pipeline_mode<synchronous>, transform_indices = @transform_3, window_bounds = array<i64: 1, 128>}, {pipeline_mode = #tpu.pipeline_mode<synchronous>, transform_indices = @transform_4, window_bounds = array<i64: 1, 128>}, {pipeline_mode = #tpu.pipeline_mode<synchronous>, transform_indices = @transform_5, window_bounds = array<i64: 1, 512>}, {pipeline_mode = #tpu.pipeline_mode<synchronous>, transform_indices = @transform_6, window_bounds = array<i64: 1, 512>}, {pipeline_mode = #tpu.pipeline_mode<synchronous>, transform_indices = @transform_7, window_bounds = array<i64: 512, 128>}, {transform_indices = @transform_8, window_bounds = array<i64: 2, 128>}]} {
    %c0_i32 = arith.constant 0 : i32
    %0 = arith.cmpi eq, %arg1, %c0_i32 : i32
    %1 = arith.extui %0 : i1 to i32
    %c0_i32_0 = arith.constant 0 : i32
    %2 = arith.cmpi ne, %1, %c0_i32_0 : i32
    scf.if %2 {
      %cst = arith.constant 0.000000e+00 : f32
      %25 = vector.broadcast %cst : f32 to vector<2x128xf32>
      %c0_13 = arith.constant 0 : index
      %c0_14 = arith.constant 0 : index
      %26 = vector.load %arg11[%c0_13, %c0_14] : memref<2x128xf32, #tpu.memory_space<vmem>>, vector<2x128xf32>
      tpu.vector_store %arg11[%c0_13, %c0_14], %25 {strides = array<i32>} : memref<2x128xf32, #tpu.memory_space<vmem>>, vector<2x128xf32>,
      %cst_15 = arith.constant 0.000000e+00 : f32
      %27 = vector.broadcast %cst_15 : f32 to vector<2x128xf32>
      %c0_16 = arith.constant 0 : index
      %c0_17 = arith.constant 0 : index
      %28 = vector.load %arg12[%c0_16, %c0_17] : memref<2x128xf32, #tpu.memory_space<vmem>>, vector<2x128xf32>
      tpu.vector_store %arg12[%c0_16, %c0_17], %27 {strides = array<i32>} : memref<2x128xf32, #tpu.memory_space<vmem>>, vector<2x128xf32>,
    } else {
    }
    %c0 = arith.constant 0 : index
    %c0_1 = arith.constant 0 : index
    %c0_2 = arith.constant 0 : index
    %c0_3 = arith.constant 0 : index
    %3 = vector.load %arg4[%c0, %c0_1, %c0_2, %c0_3] : memref<2x1x16x128xf32, #tpu.memory_space<vmem>>, vector<2x1x16x128xf32>
    %4 = vector.shape_cast %3 : vector<2x1x16x128xf32> to vector<2x16x128xf32>
    %c0_4 = arith.constant 0 : index
    %c0_5 = arith.constant 0 : index
    %5 = vector.load %arg5[%c0_4, %c0_5] : memref<1x128xf32, #tpu.memory_space<vmem>>, vector<1x128xf32>
    %6 = vector.shape_cast %5 : vector<1x128xf32> to vector<1x1x128xf32>
    %7 = vector.broadcast %6 : vector<1x1x128xf32> to vector<2x16x128xf32>
    %8 = arith.mulf %4, %7 : vector<2x16x128xf32>
    %c0_6 = arith.constant 0 : index
    %c0_7 = arith.constant 0 : index
    %9 = vector.load %arg6[%c0_6, %c0_7] : memref<1x128xf32, #tpu.memory_space<vmem>>, vector<1x128xf32>
    %10 = vector.shape_cast %9 : vector<1x128xf32> to vector<1x1x128xf32>
    %11 = vector.broadcast %10 : vector<1x1x128xf32> to vector<2x16x128xf32>
    %12 = arith.addf %8, %11 : vector<2x16x128xf32>
    %c0_8 = arith.constant 0 : index
    %13 = memref.load %arg2[%c0_8] : memref<1xi32, #tpu.memory_space<smem>>
    %c1_i32 = arith.constant 1 : i32
    %14 = arith.addi %arg1, %c1_i32 : i32
    %c16_i32 = arith.constant 16 : i32
    %15 = arith.muli %14, %c16_i32 : i32
    %16 = arith.cmpi sgt, %15, %13 : i32
    %true = arith.constant true
    %17 = arith.xori %16, %true : i1
    %18 = arith.extui %17 : i1 to i32
    %c0_i32_9 = arith.constant 0 : i32
    %19 = arith.cmpi ne, %18, %c0_i32_9 : i32
    scf.if %19 {
      %c0_13 = arith.constant 0 : index
      %c0_14 = arith.constant 0 : index
      %25 = vector.load %arg11[%c0_13, %c0_14] : memref<2x128xf32, #tpu.memory_space<vmem>>, vector<2x128xf32>
      %cst = arith.constant dense<0.000000e+00> : vector<2x128xf32>
      %26 = vector.multi_reduction <add>, %12, %cst [1] : vector<2x16x128xf32> to vector<2x128xf32>
      %27 = arith.addf %25, %26 : vector<2x128xf32>
      %c0_15 = arith.constant 0 : index
      %c0_16 = arith.constant 0 : index
      %28 = vector.load %arg11[%c0_15, %c0_16] : memref<2x128xf32, #tpu.memory_space<vmem>>, vector<2x128xf32>
      tpu.vector_store %arg11[%c0_15, %c0_16], %27 {strides = array<i32>} : memref<2x128xf32, #tpu.memory_space<vmem>>, vector<2x128xf32>,
      %c0_17 = arith.constant 0 : index
      %c0_18 = arith.constant 0 : index
      %29 = vector.load %arg12[%c0_17, %c0_18] : memref<2x128xf32, #tpu.memory_space<vmem>>, vector<2x128xf32>
      %30 = math.absf %12 : vector<2x16x128xf32>
      %cst_19 = arith.constant dense<0.000000e+00> : vector<2x128xf32>
      %31 = vector.multi_reduction <add>, %30, %cst_19 [1] : vector<2x16x128xf32> to vector<2x128xf32>
      %32 = arith.addf %29, %31 : vector<2x128xf32>
      %c0_20 = arith.constant 0 : index
      %c0_21 = arith.constant 0 : index
      %33 = vector.load %arg12[%c0_20, %c0_21] : memref<2x128xf32, #tpu.memory_space<vmem>>, vector<2x128xf32>
      tpu.vector_store %arg12[%c0_20, %c0_21], %32 {strides = array<i32>} : memref<2x128xf32, #tpu.memory_space<vmem>>, vector<2x128xf32>,
    } else {
    }
    %20 = arith.extui %16 : i1 to i32
    %c0_i32_10 = arith.constant 0 : i32
    %21 = arith.cmpi ne, %20, %c0_i32_10 : i32
    scf.if %21 {
      %25 = tpu.iota {dimensions = array<i32: 0>} : vector<16x128xi32>
      %c16_i32_13 = arith.constant 16 : i32
      %26 = arith.muli %arg1, %c16_i32_13 : i32
      %27 = vector.broadcast %26 : i32 to vector<16x128xi32>
      %28 = arith.addi %25, %27 : vector<16x128xi32>
      %29 = vector.broadcast %13 : i32 to vector<16x128xi32>
      %30 = arith.cmpi slt, %28, %29 : vector<16x128xi32>
      %cst = arith.constant 0.000000e+00 : f32
      %31 = vector.shape_cast %30 : vector<16x128xi1> to vector<1x16x128xi1>
      %32 = vector.broadcast %31 : vector<1x16x128xi1> to vector<2x16x128xi1>
      %33 = vector.broadcast %cst : f32 to vector<2x16x128xf32>
      %34 = arith.select %32, %12, %33 : vector<2x16x128xi1>, vector<2x16x128xf32>
      %c0_14 = arith.constant 0 : index
      %c0_15 = arith.constant 0 : index
      %35 = vector.load %arg11[%c0_14, %c0_15] : memref<2x128xf32, #tpu.memory_space<vmem>>, vector<2x128xf32>
      %cst_16 = arith.constant dense<0.000000e+00> : vector<2x128xf32>
      %36 = vector.multi_reduction <add>, %34, %cst_16 [1] : vector<2x16x128xf32> to vector<2x128xf32>
      %37 = arith.addf %35, %36 : vector<2x128xf32>
      %c0_17 = arith.constant 0 : index
      %c0_18 = arith.constant 0 : index
      %38 = vector.load %arg11[%c0_17, %c0_18] : memref<2x128xf32, #tpu.memory_space<vmem>>, vector<2x128xf32>
      tpu.vector_store %arg11[%c0_17, %c0_18], %37 {strides = array<i32>} : memref<2x128xf32, #tpu.memory_space<vmem>>, vector<2x128xf32>,
      %c0_19 = arith.constant 0 : index
      %c0_20 = arith.constant 0 : index
      %39 = vector.load %arg12[%c0_19, %c0_20] : memref<2x128xf32, #tpu.memory_space<vmem>>, vector<2x128xf32>
      %40 = math.absf %34 : vector<2x16x128xf32>
      %cst_21 = arith.constant dense<0.000000e+00> : vector<2x128xf32>
      %41 = vector.multi_reduction <add>, %40, %cst_21 [1] : vector<2x16x128xf32> to vector<2x128xf32>
      %42 = arith.addf %39, %41 : vector<2x128xf32>
      %c0_22 = arith.constant 0 : index
      %c0_23 = arith.constant 0 : index
      %43 = vector.load %arg12[%c0_22, %c0_23] : memref<2x128xf32, #tpu.memory_space<vmem>>, vector<2x128xf32>
      tpu.vector_store %arg12[%c0_22, %c0_23], %42 {strides = array<i32>} : memref<2x128xf32, #tpu.memory_space<vmem>>, vector<2x128xf32>,
    } else {
    }
    %c0_i32_11 = arith.constant 0 : i32
    %22 = arith.cmpi eq, %arg1, %c0_i32_11 : i32
    %23 = arith.extui %22 : i1 to i32
    %c0_i32_12 = arith.constant 0 : i32
    %24 = arith.cmpi ne, %23, %c0_i32_12 : i32
    scf.if %24 {
      %c0_13 = arith.constant 0 : index
      %25 = memref.load %arg3[%c0_13] : memref<1xf32, #tpu.memory_space<smem>>
      %c0_14 = arith.constant 0 : index
      %c0_15 = arith.constant 0 : index
      %26 = vector.load %arg11[%c0_14, %c0_15] : memref<2x128xf32, #tpu.memory_space<vmem>>, vector<2x128xf32>
      %cst = arith.constant dense<0.000000e+00> : vector<2xf32>
      %27 = vector.multi_reduction <add>, %26, %cst [1] : vector<2x128xf32> to vector<2xf32>
      %28 = vector.shape_cast %27 : vector<2xf32> to vector<2x1xf32>
      %c0_16 = arith.constant 0 : index
      %c0_17 = arith.constant 0 : index
      %29 = vector.load %arg12[%c0_16, %c0_17] : memref<2x128xf32, #tpu.memory_space<vmem>>, vector<2x128xf32>
      %cst_18 = arith.constant dense<0.000000e+00> : vector<2xf32>
      %30 = vector.multi_reduction <add>, %29, %cst_18 [1] : vector<2x128xf32> to vector<2xf32>
      %31 = vector.shape_cast %30 : vector<2xf32> to vector<2x1xf32>
      %32 = arith.addf %31, %28 : vector<2x1xf32>
      %cst_19 = arith.constant 5.000000e-01 : f32
      %33 = vector.broadcast %cst_19 : f32 to vector<2x1xf32>
      %34 = arith.mulf %33, %32 : vector<2x1xf32>
      %35 = vector.broadcast %25 : f32 to vector<2x1xf32>
      %36 = arith.mulf %34, %35 : vector<2x1xf32>
      %37 = arith.subf %31, %28 : vector<2x1xf32>
      %cst_20 = arith.constant 5.000000e-01 : f32
      %38 = vector.broadcast %cst_20 : f32 to vector<2x1xf32>
      %39 = arith.mulf %38, %37 : vector<2x1xf32>
      %40 = vector.broadcast %25 : f32 to vector<2x1xf32>
      %41 = arith.mulf %39, %40 : vector<2x1xf32>
      %c0_21 = arith.constant 0 : index
      %c0_22 = arith.constant 0 : index
      %42 = vector.load %arg7[%c0_21, %c0_22] : memref<1x512xf32, #tpu.memory_space<vmem>>, vector<1x512xf32>
      %43 = vector.broadcast %36 : vector<2x1xf32> to vector<2x512xf32>
      %44 = vector.broadcast %42 : vector<1x512xf32> to vector<2x512xf32>
      %45 = arith.mulf %43, %44 : vector<2x512xf32>
      %c0_23 = arith.constant 0 : index
      %c0_24 = arith.constant 0 : index
      %46 = vector.load %arg8[%c0_23, %c0_24] : memref<1x512xf32, #tpu.memory_space<vmem>>, vector<1x512xf32>
      %47 = vector.broadcast %41 : vector<2x1xf32> to vector<2x512xf32>
      %48 = vector.broadcast %46 : vector<1x512xf32> to vector<2x512xf32>
      %49 = arith.mulf %47, %48 : vector<2x512xf32>
      %50 = arith.addf %45, %49 : vector<2x512xf32>
      %51 = arith.mulf %50, %50 : vector<2x512xf32>
      %cst_25 = arith.constant dense<0.000000e+00> : vector<2xf32>
      %52 = vector.multi_reduction <add>, %51, %cst_25 [1] : vector<2x512xf32> to vector<2xf32>
      %53 = vector.shape_cast %52 : vector<2xf32> to vector<2x1xf32>
      %cst_26 = arith.constant 1.000000e-24 : f32
      %54 = vector.broadcast %cst_26 : f32 to vector<2x1xf32>
      %55 = arith.maximumf %53, %54 : vector<2x1xf32>
      %56 = math.rsqrt %55 : vector<2x1xf32>
      %57 = vector.broadcast %56 : vector<2x1xf32> to vector<2x512xf32>
      %58 = arith.mulf %50, %57 : vector<2x512xf32>
      %c0_27 = arith.constant 0 : index
      %c0_28 = arith.constant 0 : index
      %59 = vector.load %arg9[%c0_27, %c0_28] : memref<512x128xf32, #tpu.memory_space<vmem>>, vector<512x128xf32>
      %cst_29 = arith.constant dense<0.000000e+00> : vector<2x128xf32>
      %60 = tpu.matmul %58, %59, %cst_29 {dimension_numbers = #tpu.dot_dimension_numbers<[1], [0], [0], [1], [0, 0, 1, 1], [], []>} : vector<2x512xf32>, vector<512x128xf32>, vector<2x128xf32> -> vector<2x128xf32>
      %c0_30 = arith.constant 0 : index
      %c0_31 = arith.constant 0 : index
      %61 = vector.load %arg10[%c0_30, %c0_31] : memref<2x128xf32, #tpu.memory_space<vmem>>, vector<2x128xf32>
      tpu.vector_store %arg10[%c0_30, %c0_31], %60 {strides = array<i32>} : memref<2x128xf32, #tpu.memory_space<vmem>>, vector<2x128xf32>,
    } else {
    }
    return
  }
  func.func @transform_0(%arg0: i32, %arg1: i32) -> i32 {
    %c0_i32 = arith.constant 0 : i32
    %c0_i32_0 = arith.constant 0 : i32
    return %c0_i32 : i32
  }
  func.func @transform_1(%arg0: i32, %arg1: i32) -> i32 {
    %c0_i32 = arith.constant 0 : i32
    %c0_i32_0 = arith.constant 0 : i32
    return %c0_i32 : i32
  }
  func.func @transform_2(%arg0: i32, %arg1: i32) -> (i32, i32, i32, i32) {
    %c0_i32 = arith.constant 0 : i32
    %c0_i32_0 = arith.constant 0 : i32
    %c0_i32_1 = arith.constant 0 : i32
    return %arg0, %c0_i32, %arg1, %c0_i32_0 : i32, i32, i32, i32
  }
  func.func @transform_3(%arg0: i32, %arg1: i32) -> (i32, i32) {
    %c0_i32 = arith.constant 0 : i32
    %c0_i32_0 = arith.constant 0 : i32
    %c0_i32_1 = arith.constant 0 : i32
    return %c0_i32, %c0_i32_0 : i32, i32
  }
  func.func @transform_4(%arg0: i32, %arg1: i32) -> (i32, i32) {
    %c0_i32 = arith.constant 0 : i32
    %c0_i32_0 = arith.constant 0 : i32
    %c0_i32_1 = arith.constant 0 : i32
    return %c0_i32, %c0_i32_0 : i32, i32
  }
  func.func @transform_5(%arg0: i32, %arg1: i32) -> (i32, i32) {
    %c0_i32 = arith.constant 0 : i32
    %c0_i32_0 = arith.constant 0 : i32
    %c0_i32_1 = arith.constant 0 : i32
    return %c0_i32, %c0_i32_0 : i32, i32
  }
  func.func @transform_6(%arg0: i32, %arg1: i32) -> (i32, i32) {
    %c0_i32 = arith.constant 0 : i32
    %c0_i32_0 = arith.constant 0 : i32
    %c0_i32_1 = arith.constant 0 : i32
    return %c0_i32, %c0_i32_0 : i32, i32
  }
  func.func @transform_7(%arg0: i32, %arg1: i32) -> (i32, i32) {
    %c0_i32 = arith.constant 0 : i32
    %c0_i32_0 = arith.constant 0 : i32
    %c0_i32_1 = arith.constant 0 : i32
    return %c0_i32, %c0_i32_0 : i32, i32
  }
  func.func @transform_8(%arg0: i32, %arg1: i32) -> (i32, i32) {
    %c0_i32 = arith.constant 0 : i32
    %c0_i32_0 = arith.constant 0 : i32
    return %arg0, %c0_i32 : i32, i32
  }
}

</mosaic_0001>

<bundles_post_ra>
// kernel: tpu_custom_call.1
= control target key start
LH: loop header
LB: loop body
LE: loop exit
PB: predicated region body
PF: predicated region fallthrough
CT: control target
= control target key end

     0   :  { %s888_s0 = inlined_call_operand.<no memory space> [shape: s32[1], index: 0, kind: input, shape index: {}]   ;;  %s889_s1 = inlined_call_operand.<no memory space> [shape: f32[1], index: 1, kind: input, shape index: {}]   ;;  %s890_s2 = inlined_call_operand.hbm [shape: f32[2,1,16,128], index: 2, kind: input, shape index: {}]   ;;  %s891_s3 = inlined_call_operand.vmem [shape: f32[1,128], index: 3, kind: input, shape index: {}]   ;;  %s892_s4 = inlined_call_operand.vmem [shape: f32[1,128], index: 4, kind: input, shape index: {}]   ;;  %s893_s5 = inlined_call_operand.vmem [shape: f32[1,512], index: 5, kind: input, shape index: {}]   ;;  %s894_s6 = inlined_call_operand.vmem [shape: f32[1,512], index: 6, kind: input, shape index: {}]   ;;  %s895_s7 = inlined_call_operand.hbm [shape: f32[512,128], index: 7, kind: input, shape index: {}]   ;;  %s896_s8 = inlined_call_operand.hbm [shape: f32[2,128], index: 8, kind: output, shape index: {}]  }
   0x1   :  { %14 = sst [smem:[#allocation5]] %s889_s1 }
   0x2   :  { %15 = vsyncpa [#allocation7], 0 }
   0x3   :  { %16 = vsyncpa [#allocation10], 0 }
   0x4   :  { %17 = vsyncpa [#allocation8], 0  ;;  %s751_s29 = smov [#allocation6]   ;;  %s679_s11 = scalar_lea.hbm %s890_s2, 512 }
   0x5   :  { %s27_s30 = sshll.u32 %s751_s29, 4  ;;  %p680_p0 = scmp.ne.s32.totalorder %s890_s2, %s679_s11  ;;  %s28_s30 = int_to_ptr.vmem [resolvable:$true] %s27_s30 }
   0x6   :  { %p683_p1 = scmp.lt.u32.totalorder %s679_s11, %s890_s2 }
   0x8   :  { %p685_p2 = pnand %p683_p1, %p680_p0 }
   0xa   :  { %688 = shalt.err (!%p685_p2)
}
   0xb   :  { %s689_s1 = scalar_lea.vmem %s28_s30, 512  ;;  %p694_p4 = scmp.lt.s32.totalorder %s28_s30, %s28_s30 }
   0xc   :  { %p690_p3 = scmp.ne.s32.totalorder %s28_s30, %s689_s1  ;;  %p695_p5 = scmp.lt.s32.totalorder %s689_s1, %s689_s1 }
   0xe   :  { %p696_p6 = por %p695_p5, %p694_p4 }
  0x10   :  { %p697_p7 = pnand %p696_p6, %p690_p3 }
  0x12   :  { %700 = shalt.err (!%p697_p7)
}
  0x13   :  { %s752_s16 = smov 128   ;;  %s753_s17 = smov 8  }
  0x14   :  { %33 = dma.hbm_to_vmem [thread:$0]  %s890_s2, 512, %s28_s30, [#allocation7], %s752_s16, %s752_s16, %s753_s17  }
  0x15   :  { %s754_s20 = smov [#allocation9]   ;;  %s701_s24 = scalar_lea.hbm %s895_s7, 8192 }
  0x16   :  { %s47_s21 = sshll.u32 %s754_s20, 4  ;;  %p702_p8 = scmp.ne.s32.totalorder %s895_s7, %s701_s24  ;;  %s48_s21 = int_to_ptr.vmem [resolvable:$true] %s47_s21 }
  0x17   :  { %p705_p9 = scmp.lt.u32.totalorder %s701_s24, %s895_s7 }
  0x19   :  { %p707_p10 = pnand %p705_p9, %p702_p8 }
  0x1b   :  { %710 = shalt.err (!%p707_p10)
}
  0x1c   :  { %s711_s29 = scalar_lea.vmem %s48_s21, 8192  ;;  %p716_p12 = scmp.lt.s32.totalorder %s48_s21, %s48_s21 }
  0x1d   :  { %p712_p11 = scmp.ne.s32.totalorder %s48_s21, %s711_s29  ;;  %p717_p13 = scmp.lt.s32.totalorder %s711_s29, %s711_s29 }
  0x1f   :  { %p718_p0 = por %p717_p13, %p716_p12 }
  0x21   :  { %p719_p1 = pnand %p718_p0, %p712_p11 }
  0x23   :  { %722 = shalt.err (!%p719_p1)
}
  0x24   :  { %53 = dma.hbm_to_vmem [thread:$0]  %s895_s7, 8192, %s48_s21, [#allocation10], %s752_s16, %s752_s16, %s753_s17  }
  0x25   :  { %745 = dma.done.wait [#allocation7], 512  }
  0x26   :  { %746 = vsyncadd [#allocation7], 4294966784 }
  0x27   :  { %747 = dma.done.wait [#allocation10], 8192  }
  0x28   :  { %748 = vsyncadd [#allocation10], 4294959104  ;;  %v755_v0 = vmov 0.0   ;;  %v66_v1 = vld [vmem:[#allocation6] sm:$0xff]  ;;  %v67_v2 = vld [vmem:[#allocation6 + $0x8] sm:$0xff]  ;;  %p535_p2 = scmp.lt.s32.totalorder %s888_s0, 16 }
  0x29   :  { %64 = vst [vmem:[#allocation2] sm:$0x3] %v755_v0  ;;  %65 = vst [vmem:[#allocation3] sm:$0x3] %v755_v0  ;;  %v68_v3 = vld [vmem:[#allocation6 + $0x10] sm:$0xff]  ;;  %v69_v4 = vld [vmem:[#allocation6 + $0x18] sm:$0xff] }
  0x2a   :  { %v531_v5 = vld [vmem:[%s891_s3] ss:$0 sm:$0xff]  ;;  %99 = sbr.rel (%p535_p2) target bundleno = 68 (0x44), region = 49  ;;  %vm117_vm0 = vcmask (!%p535_p2), 1041409  }
  0x2b   :  { %v532_v6 = vld [vmem:[%s892_s4] ss:$0 sm:$0xff]  ;;  %v77_v7 = vmul.f32 %v531_v5, %v66_v1  ;;  %v78_v8 = vmul.f32 %v531_v5, %v67_v2  ;;  %v79_v9 = vmul.f32 %v531_v5, %v68_v3  ;;  %v80_v10 = vmul.f32 %v531_v5, %v69_v4 }
  0x2d   :  { %v88_v11 = vadd.f32 %v532_v6, %v77_v7  ;;  %v89_v12 = vadd.f32 %v532_v6, %v78_v8  ;;  %v90_v13 = vadd.f32 %v532_v6, %v79_v9  ;;  %v91_v14 = vadd.f32 %v532_v6, %v80_v10 }
  0x2f   :  { %v101_v15 = vadd.f32 (!%p535_p2), %v89_v12, %v88_v11  ;;  %v108_v16 = vadd.f32 (!%p535_p2), %v91_v14, %v90_v13  ;;  %v123_v17 = vand.u32 (!%p535_p2), 2147483647, %v88_v11  ;;  %v124_v18 = vand.u32 (!%p535_p2), 2147483647, %v89_v12 }
  0x30   :  { %v125_v19 = vand.u32 (!%p535_p2), 2147483647, %v90_v13  ;;  %v126_v22 = vand.u32 (!%p535_p2), 2147483647, %v91_v14  ;;  %v100_v40 = vld [vmem:[#allocation2] sm:$0x3] (!%p535_p2) }
  0x31   :  { %v102_v20 = vrot.slane %v101_v15, 4  ;;  %v109_v21 = vrot.slane %v108_v16, 4  ;;  %v127_v23 = vadd.f32 %v124_v18, %v123_v17  ;;  %v122_v49 = vld [vmem:[#allocation3] sm:$0x3] }
  0x32   :  { %v134_v26 = vadd.f32 %v126_v22, %v125_v19 }
  0x33   :  { %v103_v24 = vadd.f32 %v102_v20, %v101_v15  ;;  %v110_v25 = vadd.f32 %v109_v21, %v108_v16  ;;  %v128_v27 = vrot.slane %v127_v23, 4 }
  0x34   :  { %v135_v30 = vrot.slane %v134_v26, 4 }
  0x35   :  { %v104_v28 = vrot.slane %v103_v24, 2  ;;  %v111_v29 = vrot.slane %v110_v25, 2  ;;  %v129_v31 = vadd.f32 %v128_v27, %v127_v23 }
  0x36   :  { %v136_v34 = vadd.f32 %v135_v30, %v134_v26 }
  0x37   :  { %v105_v32 = vadd.f32 %v104_v28, %v103_v24  ;;  %v112_v33 = vadd.f32 %v111_v29, %v110_v25  ;;  %v130_v35 = vrot.slane %v129_v31, 2 }
  0x38   :  { %v137_v38 = vrot.slane %v136_v34, 2 }
  0x39   :  { %v106_v36 = vrot.slane %v105_v32, 1  ;;  %v113_v37 = vrot.slane %v112_v33, 1  ;;  %v131_v39 = vadd.f32 %v130_v35, %v129_v31 }
  0x3a   :  { %v138_v43 = vadd.f32 %v137_v38, %v136_v34 }
  0x3b   :  { %v107_v41 = vadd.f32 %v106_v36, %v105_v32  ;;  %v114_v42 = vadd.f32 %v113_v37, %v112_v33  ;;  %v132_v44 = vrot.slane %v131_v39, 1 }
  0x3c   :  { %v139_v46 = vrot.slane %v138_v43, 1 }
  0x3d   :  { %v118_v45 = vsel %vm117_vm0, %v114_v42, %v107_v41  ;;  %v133_v48 = vadd.f32 %v132_v44, %v131_v39 }
  0x3e   :  { %v120_v47 = vadd.f32 %v118_v45, %v100_v40  ;;  %v140_v50 = vadd.f32 %v139_v46, %v138_v43 }
  0x40   :  { %121 = vst [vmem:[#allocation2] sm:$0x3] %v120_v47  ;;  %v143_v51 = vsel %vm117_vm0, %v140_v50, %v133_v48 }
  0x41   :  { %v145_v52 = vadd.f32 %v143_v51, %v122_v49 }
  0x43   :  { %146 = vst [vmem:[#allocation3] sm:$0x3] %v145_v52 }
  0x44 PF:  { %p536_p3 = scmp.ge.s32.totalorder %s888_s0, 16 }
  0x45   :  { %v150_v53 = vlaneseq (!%p536_p3)  ;;  %v157_v54 = vstv (!%p536_p3), %s888_s0  ;;  %vm185_vm3 = vcmask (!%p536_p3), 1041409  }
  0x46   :  { %149 = sbr.rel (%p536_p3) target bundleno = 97 (0x61), region = 53 }
  0x47   :  { %v151_v55 = vshrl.u32 (!%p536_p3), %v150_v53, 7  ;;  %v168_v23 = vld [vmem:[#allocation2] sm:$0x3] (!%p536_p3) }
  0x49   :  { %v152_v56 = vadd.s32 (!%p536_p3), 8, %v151_v55  ;;  %vm158_vm1 = vcmp.lt.s32.totalorder (!%p536_p3), %v151_v55, %v157_v54 }
  0x4a   :  { %v164_v57 = vsel (!%p536_p3), %vm158_vm1, %v88_v11, 0.0  ;;  %v166_v58 = vsel (!%p536_p3), %vm158_vm1, %v90_v13, 0.0  ;;  %v190_v29 = vld [vmem:[#allocation3] sm:$0x3] (!%p536_p3) }
  0x4b   :  { %vm159_vm2 = vcmp.lt.s32.totalorder (!%p536_p3), %v152_v56, %v157_v54  ;;  %v191_v59 = vand.u32 (!%p536_p3), 2147483647, %v164_v57  ;;  %v193_v60 = vand.u32 (!%p536_p3), 2147483647, %v166_v58 }
  0x4c   :  { %v165_v61 = vsel (!%p536_p3), %vm159_vm2, %v89_v12, 0.0  ;;  %v167_v62 = vsel (!%p536_p3), %vm159_vm2, %v91_v14, 0.0 }
  0x4d   :  { %v169_v63 = vadd.f32 %v165_v61, %v164_v57  ;;  %v176_v0 = vadd.f32 %v167_v62, %v166_v58  ;;  %v192_v1 = vand.u32 2147483647, %v165_v61  ;;  %v194_v2 = vand.u32 2147483647, %v167_v62 }
  0x4f   :  { %v170_v3 = vrot.slane %v169_v63, 4  ;;  %v177_v4 = vrot.slane %v176_v0, 4  ;;  %v195_v5 = vadd.f32 %v192_v1, %v191_v59  ;;  %v202_v6 = vadd.f32 %v194_v2, %v193_v60 }
  0x51   :  { %v171_v7 = vadd.f32 %v170_v3, %v169_v63  ;;  %v178_v8 = vadd.f32 %v177_v4, %v176_v0  ;;  %v196_v9 = vrot.slane %v195_v5, 4  ;;  %v203_v10 = vrot.slane %v202_v6, 4 }
  0x53   :  { %v172_v15 = vrot.slane %v171_v7, 2  ;;  %v179_v11 = vrot.slane %v178_v8, 2  ;;  %v197_v13 = vadd.f32 %v196_v9, %v195_v5  ;;  %v204_v16 = vadd.f32 %v203_v10, %v202_v6 }
  0x55   :  { %v173_v17 = vadd.f32 %v172_v15, %v171_v7  ;;  %v180_v18 = vadd.f32 %v179_v11, %v178_v8  ;;  %v198_v12 = vrot.slane %v197_v13, 2  ;;  %v205_v14 = vrot.slane %v204_v16, 2 }
  0x57   :  { %v174_v19 = vrot.slane %v173_v17, 1  ;;  %v181_v20 = vrot.slane %v180_v18, 1  ;;  %v199_v21 = vadd.f32 %v198_v12, %v197_v13  ;;  %v206_v22 = vadd.f32 %v205_v14, %v204_v16 }
  0x59   :  { %v175_v24 = vadd.f32 %v174_v19, %v173_v17  ;;  %v182_v25 = vadd.f32 %v181_v20, %v180_v18  ;;  %v200_v26 = vrot.slane %v199_v21, 1  ;;  %v207_v27 = vrot.slane %v206_v22, 1 }
  0x5b   :  { %v186_v28 = vsel %vm185_vm3, %v182_v25, %v175_v24  ;;  %v201_v30 = vadd.f32 %v200_v26, %v199_v21  ;;  %v208_v31 = vadd.f32 %v207_v27, %v206_v22 }
  0x5c   :  { %v188_v32 = vadd.f32 %v186_v28, %v168_v23 }
  0x5d   :  { %v211_v33 = vsel %vm185_vm3, %v208_v31, %v201_v30 }
  0x5e   :  { %189 = vst [vmem:[#allocation2] sm:$0x3] %v188_v32  ;;  %v213_v34 = vadd.f32 %v211_v33, %v190_v29 }
  0x60   :  { %214 = vst [vmem:[#allocation3] sm:$0x3] %v213_v34 }
  0x61 PF:  { %vm220_vm4 = vcmask 1041408   ;;  %v326_v39 = vld [vmem:[#allocation9 + $0x80] sm:$0xff]  ;;  %v327_v40 = vld [vmem:[#allocation9 + $0x88] sm:$0xff]  ;;  %v328_v50 = vld [vmem:[#allocation9 + $0x90] sm:$0xff]  ;;  %v237_v23 = vlaneseq  ;;  %s218_s0 = sld [smem:[#allocation5]] }
  0x62   :  { %v358_v41 = vld [vmem:[#allocation9 + $0x180] sm:$0xff]  ;;  %v607_v42 = vpack.c.bf16 %v327_v40, %v326_v39  ;;  %v359_v43 = vld [vmem:[#allocation9 + $0x188] sm:$0xff]  ;;  %v329_v52 = vld [vmem:[#allocation9 + $0x98] sm:$0xff] }
  0x63   :  { %v310_v44 = vld [vmem:[#allocation9] sm:$0xff]  ;;  %v311_v45 = vld [vmem:[#allocation9 + $0x8] sm:$0xff]  ;;  %v639_v46 = vpack.c.bf16 %v359_v43, %v358_v41  ;;  %v360_v53 = vld [vmem:[#allocation9 + $0x190] sm:$0xff]  ;;  %v611_v55 = vpack.c.bf16 %v329_v52, %v328_v50  ;;  %v238_v24 = vshrl.u32 %v237_v23, 7 }
  0x64   :  { %v609_v47 = vpack.c.bf16 %v311_v45, %v310_v44  ;;  %v342_v48 = vld [vmem:[#allocation9 + $0x100] sm:$0xff]  ;;  %v343_v49 = vld [vmem:[#allocation9 + $0x108] sm:$0xff]  ;;  %608 = vmatprep.subr.bf16.mxu0 %v607_v42  ;;  %v361_v54 = vld [vmem:[#allocation9 + $0x198] sm:$0xff] }
  0x65   :  { %v219_v35 = vld [vmem:[#allocation2] sm:$0x3]  ;;  %v641_v51 = vpack.c.bf16 %v343_v49, %v342_v48  ;;  %640 = vmatprep.subr.bf16.mxu1 %v639_v46  ;;  %v643_v56 = vpack.c.bf16 %v361_v54, %v360_v53  ;;  %v312_v57 = vld [vmem:[#allocation9 + $0x10] sm:$0xff]  ;;  %v330_v62 = vld [vmem:[#allocation9 + $0xa0] sm:$0xff]  ;;  %v239_v26 = vsub.s32 0, %v238_v24  ;;  %v243_v27 = vsub.s32 1, %v238_v24 }
  0x66   :  { %v221_v37 = vsel %vm220_vm4, %v219_v35, 0.0  ;;  %610 = vmatpush3.bf16.msra.mxu0 %v609_v47  ;;  %v313_v58 = vld [vmem:[#allocation9 + $0x18] sm:$0xff]  ;;  %v344_v59 = vld [vmem:[#allocation9 + $0x110] sm:$0xff]  ;;  %v331_v63 = vld [vmem:[#allocation9 + $0xa8] sm:$0xff]  ;;  %v247_v29 = vsub.s32 2, %v238_v24  ;;  %v251_v30 = vsub.s32 3, %v238_v24 }
  0x67   :  { %v224_v36 = vld [vmem:[#allocation3] sm:$0x3]  ;;  %222 = vadd.xlane.f32.xlu0 %v221_v37  ;;  %642 = vmatpush3.bf16.msra.mxu1 %v641_v51  ;;  %v613_v60 = vpack.c.bf16 %v313_v58, %v312_v57  ;;  %v615_v1 = vpack.c.bf16 %v331_v63, %v330_v62  ;;  %v362_v2 = vld [vmem:[#allocation9 + $0x1a0] sm:$0xff]  ;;  %v363_v3 = vld [vmem:[#allocation9 + $0x1a8] sm:$0xff]  ;;  %v230_v35 = vstv %s218_s0 }
  0x68   :  { %v225_v38 = vsel %vm220_vm4, %v224_v36, 0.0  ;;  %v345_v61 = vld [vmem:[#allocation9 + $0x118] sm:$0xff]  ;;  %612 = vmatprep.subr.bf16.mxu0 %v611_v55  ;;  %644 = vmatprep.subr.bf16.mxu1 %v643_v56  ;;  %v314_v4 = vld [vmem:[#allocation9 + $0x20] sm:$0xff]  ;;  %v647_v5 = vpack.c.bf16 %v363_v3, %v362_v2  ;;  %v315_v6 = vld [vmem:[#allocation9 + $0x28] sm:$0xff] }
  0x69   :  { %v645_v0 = vpack.c.bf16 %v345_v61, %v344_v59  ;;  %v346_v7 = vld [vmem:[#allocation9 + $0x120] sm:$0xff]  ;;  %v347_v8 = vld [vmem:[#allocation9 + $0x128] sm:$0xff]  ;;  %v617_v9 = vpack.c.bf16 %v315_v6, %v314_v4  ;;  %v332_v10 = vld [vmem:[#allocation9 + $0xb0] sm:$0xff] }
  0x6a   :  { %614 = vmatpush3.bf16.msra.mxu0 %v613_v60  ;;  %v333_v15 = vld [vmem:[#allocation9 + $0xb8] sm:$0xff]  ;;  %v364_v11 = vld [vmem:[#allocation9 + $0x1b0] sm:$0xff]  ;;  %v649_v13 = vpack.c.bf16 %v347_v8, %v346_v7  ;;  %v334_v7 = vld [vmem:[#allocation9 + $0xc0] sm:$0xff] }
  0x6b   :  { %226 = vadd.xlane.f32.xlu0 %v225_v38  ;;  %646 = vmatpush3.bf16.msra.mxu1 %v645_v0  ;;  %v619_v16 = vpack.c.bf16 %v333_v15, %v332_v10  ;;  %v365_v17 = vld [vmem:[#allocation9 + $0x1b8] sm:$0xff]  ;;  %v316_v18 = vld [vmem:[#allocation9 + $0x30] sm:$0xff]  ;;  %v335_v8 = vld [vmem:[#allocation9 + $0xc8] sm:$0xff] }
  0x6c   :  { %616 = vmatprep.subr.bf16.mxu0 %v615_v1  ;;  %v317_v12 = vld [vmem:[#allocation9 + $0x38] sm:$0xff]  ;;  %648 = vmatprep.subr.bf16.mxu1 %v647_v5  ;;  %v651_v14 = vpack.c.bf16 %v365_v17, %v364_v11  ;;  %v348_v19 = vld [vmem:[#allocation9 + $0x130] sm:$0xff]  ;;  %v623_v10 = vpack.c.bf16 %v335_v8, %v334_v7  ;;  %v367_v15 = vld [vmem:[#allocation9 + $0x1c8] sm:$0xff] }
  0x6d   :  { %v349_v20 = vld [vmem:[#allocation9 + $0x138] sm:$0xff]  ;;  %v621_v21 = vpack.c.bf16 %v317_v12, %v316_v18  ;;  %v318_v11 = vld [vmem:[#allocation9 + $0x40] sm:$0xff]  ;;  %v351_v12 = vld [vmem:[#allocation9 + $0x148] sm:$0xff] }
  0x6e   :  { %618 = vmatpush3.bf16.msra.mxu0 %v617_v9  ;;  %v653_v22 = vpack.c.bf16 %v349_v20, %v348_v19  ;;  %v235_v28 = vld [vmem:[%s893_s5] sm:$0xf]  ;;  %v366_v9 = vld [vmem:[#allocation9 + $0x1c0] sm:$0xff]  ;;  %v336_v19 = vld [vmem:[#allocation9 + $0xd0] sm:$0xff]  ;;  %s756_s5 = smov [#allocation11]  }
  0x6f   :  { %650 = vmatpush3.bf16.msra.mxu1 %v649_v13  ;;  %620 = vmatprep.subr.bf16.mxu0 %v619_v16  ;;  %v261_v34 = vld [vmem:[%s894_s6] sm:$0xf]  ;;  %v240_v36 = vrot.slane %v235_v28, %v239_v26  ;;  %v244_v37 = vrot.slane %v235_v28, %v243_v27  ;;  %v248_v40 = vrot.slane %v235_v28, %v247_v29  ;;  %v319_v13 = vld [vmem:[#allocation9 + $0x48] sm:$0xff]  ;;  %v350_v18 = vld [vmem:[#allocation9 + $0x140] sm:$0xff]  ;;  %s521_s6 = sshll.u32 %s756_s5, 4  ;;  %s522_s6 = int_to_ptr.vmem [resolvable:$true] %s521_s6 }
  0x70   :  { %652 = vmatprep.subr.bf16.mxu1 %v651_v14  ;;  %v252_v41 = vrot.slane %v235_v28, %v251_v30  ;;  %v266_v42 = vrot.slane %v261_v34, %v239_v26  ;;  %v270_v43 = vrot.slane %v261_v34, %v243_v27  ;;  %v274_v44 = vrot.slane %v261_v34, %v247_v29  ;;  %v337_v20 = vld [vmem:[#allocation9 + $0xd8] sm:$0xff]  ;;  %v320_v24 = vld [vmem:[#allocation9 + $0x50] sm:$0xff]  ;;  %s723_s19 = scalar_lea.vmem %s522_s6, 32  ;;  %p728_p5 = scmp.lt.s32.totalorder %s522_s6, %s522_s6 }
  0x71   :  { %v278_v45 = vrot.slane %v261_v34, %v251_v30  ;;  %v655_v16 = vpack.c.bf16 %v367_v15, %v366_v9  ;;  %v625_v17 = vpack.c.bf16 %v319_v13, %v318_v11  ;;  %v657_v14 = vpack.c.bf16 %v351_v12, %v350_v18  ;;  %v369_v23 = vld [vmem:[#allocation9 + $0x1d8] sm:$0xff]  ;;  %v352_v28 = vld [vmem:[#allocation9 + $0x150] sm:$0xff]  ;;  %v338_v30 = vld [vmem:[#allocation9 + $0xe0] sm:$0xff]  ;;  %p724_p4 = scmp.ne.s32.totalorder %s522_s6, %s723_s19  ;;  %p729_p6 = scmp.lt.s32.totalorder %s723_s19, %s723_s19 }
  0x72   :  { %622 = vmatpush3.bf16.msra.mxu0 %v621_v21  ;;  %v368_v21 = vld [vmem:[#allocation9 + $0x1d0] sm:$0xff]  ;;  %v353_v29 = vld [vmem:[#allocation9 + $0x158] sm:$0xff]  ;;  %v371_v34 = vld [vmem:[#allocation9 + $0x1e8] sm:$0xff] }
  0x73   :  { %654 = vmatpush3.bf16.msra.mxu1 %v653_v22  ;;  %624 = vmatprep.subr.bf16.mxu0 %v623_v10  ;;  %v627_v22 = vpack.c.bf16 %v337_v20, %v336_v19  ;;  %v659_v26 = vpack.c.bf16 %v369_v23, %v368_v21  ;;  %p730_p7 = por %p729_p6, %p728_p5 }
  0x74   :  { %656 = vmatprep.subr.bf16.mxu1 %v655_v16 }
  0x75   :  { %p731_p8 = pnand %p730_p7, %p724_p4 }
  0x76   :  { %626 = vmatpush3.bf16.msra.mxu0 %v625_v17 }
  0x77   :  { %658 = vmatpush3.bf16.msra.mxu1 %v657_v14  ;;  %628 = vmatprep.subr.bf16.mxu0 %v627_v22 }
  0x78   :  { %660 = vmatprep.subr.bf16.mxu1 %v659_v26 }
  0xf4   :  { %v223_v25 = vpop.xlane.xlu0 %222 }
  0xf8   :  { %v227_v31 = vpop.xlane.xlu0 %226 }
  0xf9   :  { %v228_v32 = vadd.f32 %v227_v31, %v223_v25  ;;  %v232_v33 = vsub.f32 %v227_v31, %v223_v25  ;;  %v321_v25 = vld [vmem:[#allocation9 + $0x58] sm:$0xff]  ;;  %v661_v31 = vpack.c.bf16 %v353_v29, %v352_v28 }
  0xfa   :  { %v629_v27 = vpack.c.bf16 %v321_v25, %v320_v24 }
  0xfb   :  { %v229_v38 = vmul.f32 0.5, %v228_v32  ;;  %v233_v39 = vmul.f32 0.5, %v232_v33  ;;  %v339_v32 = vld [vmem:[#allocation9 + $0xe8] sm:$0xff]  ;;  %v370_v33 = vld [vmem:[#allocation9 + $0x1e0] sm:$0xff]  ;;  %662 = vmatpush3.bf16.msra.mxu1 %v661_v31 }
  0xfc   :  { %630 = vmatpush3.bf16.msra.mxu0 %v629_v27 }
  0xfd   :  { %v231_v46 = vmul.f32 %v230_v35, %v229_v38  ;;  %v234_v47 = vmul.f32 %v233_v39, %v230_v35  ;;  %v631_v35 = vpack.c.bf16 %v339_v32, %v338_v30  ;;  %v323_v38 = vld [vmem:[#allocation9 + $0x68] sm:$0xff]  ;;  %v354_v39 = vld [vmem:[#allocation9 + $0x160] sm:$0xff] }
  0xff   :  { %v257_v48 = vmul.f32 %v240_v36, %v231_v46  ;;  %v258_v49 = vmul.f32 %v244_v37, %v231_v46  ;;  %v259_v50 = vmul.f32 %v248_v40, %v231_v46  ;;  %v260_v51 = vmul.f32 %v252_v41, %v231_v46  ;;  %v322_v37 = vld [vmem:[#allocation9 + $0x60] sm:$0xff]  ;;  %v355_v41 = vld [vmem:[#allocation9 + $0x168] sm:$0xff]  ;;  %632 = vmatprep.subr.bf16.mxu0 %v631_v35  ;;  %v372_v46 = vld [vmem:[#allocation9 + $0x1f0] sm:$0xff] }
 0x100   :  { %v283_v52 = vmul.f32 %v266_v42, %v234_v47  ;;  %v284_v53 = vmul.f32 %v270_v43, %v234_v47  ;;  %v285_v54 = vmul.f32 %v274_v44, %v234_v47  ;;  %v286_v55 = vmul.f32 %v278_v45, %v234_v47  ;;  %v340_v42 = vld [vmem:[#allocation9 + $0xf0] sm:$0xff]  ;;  %v341_v43 = vld [vmem:[#allocation9 + $0xf8] sm:$0xff] }
 0x101   :  { %v663_v36 = vpack.c.bf16 %v371_v34, %v370_v33  ;;  %v633_v40 = vpack.c.bf16 %v323_v38, %v322_v37  ;;  %v665_v44 = vpack.c.bf16 %v355_v41, %v354_v39  ;;  %v635_v45 = vpack.c.bf16 %v341_v43, %v340_v42  ;;  %v373_v47 = vld [vmem:[#allocation9 + $0x1f8] sm:$0xff] }
 0x102   :  { %v852_v56 = vadd.f32 %v283_v52, %v257_v48  ;;  %v854_v57 = vadd.f32 %v284_v53, %v258_v49  ;;  %v856_v58 = vadd.f32 %v285_v54, %v259_v50  ;;  %v858_v59 = vadd.f32 %v286_v55, %v260_v51  ;;  %v324_v48 = vld [vmem:[#allocation9 + $0x70] sm:$0xff]  ;;  %v325_v50 = vld [vmem:[#allocation9 + $0x78] sm:$0xff] }
 0x103   :  { %664 = vmatprep.subr.bf16.mxu1 %v663_v36  ;;  %v667_v49 = vpack.c.bf16 %v373_v47, %v372_v46  ;;  %v356_v51 = vld [vmem:[#allocation9 + $0x170] sm:$0xff]  ;;  %v357_v52 = vld [vmem:[#allocation9 + $0x178] sm:$0xff]  ;;  %634 = vmatpush3.bf16.msra.mxu0 %v633_v40  ;;  %v637_v53 = vpack.c.bf16 %v325_v50, %v324_v48 }
 0x104   :  { %v291_v60 = vmul.f32 %v852_v56, %v852_v56  ;;  %v292_v61 = vmul.f32 %v854_v57, %v854_v57  ;;  %v293_v62 = vmul.f32 %v856_v58, %v856_v58  ;;  %v294_v63 = vmul.f32 %v858_v59, %v858_v59  ;;  %666 = vmatpush3.bf16.msra.mxu1 %v665_v44 }
 0x105   :  { %636 = vmatprep.subr.bf16.mxu0 %v635_v45  ;;  %v669_v54 = vpack.c.bf16 %v357_v52, %v356_v51  ;;  %668 = vmatprep.subr.bf16.mxu1 %v667_v49 }
 0x106   :  { %v295_v0 = vsel %vm220_vm4, %v291_v60, 0.0  ;;  %v296_v1 = vsel %vm220_vm4, %v292_v61, 0.0  ;;  %v298_v3 = vsel %vm220_vm4, %v293_v62, 0.0  ;;  %v300_v5 = vsel %vm220_vm4, %v294_v63, 0.0 }
 0x107   :  { %v297_v2 = vadd.f32 %v296_v1, %v295_v0  ;;  %638 = vmatpush3.bf16.msra.mxu0 %v637_v53 }
 0x108   :  { %670 = vmatpush3.bf16.msra.mxu1 %v669_v54 }
 0x109   :  { %v299_v4 = vadd.f32 %v298_v3, %v297_v2 }
 0x10b   :  { %v301_v6 = vadd.f32 %v300_v5, %v299_v4 }
 0x10d   :  { %302 = vadd.xlane.f32.xlu1 %v301_v6 }
 0x19a   :  { %v303_v55 = vpop.xlane.xlu1 %302 }
 0x19b   :  { %v304_v60 = vmax.f32 %v303_v55, 1e-24 }
 0x19d   :  { %677 = vrsqrt.f32 %v304_v60 }
 0x1a7   :  { %v678_v61 = vpop.eup %677 }
 0x1a8   :  { %v307_v62 = vmul.f32 %v678_v61, %v854_v57  ;;  %v309_v63 = vmul.f32 %v678_v61, %v858_v59  ;;  %v306_v0 = vmul.f32 %v678_v61, %v852_v56  ;;  %v308_v1 = vmul.f32 %v678_v61, %v856_v58 }
 0x1aa   :  { %438 = vmatprep.mubr.f32.mxu0 %v307_v62  ;;  %508 = vmatprep.mubr.f32.mxu1 %v309_v63 }
 0x1ab   :  { %439 = vmatmul.mubr.f32.vlgmr.msra.gmra.mrb[0].mxu0 %v306_v0  ;;  %509 = vmatmul.mubr.f32.vlgmr.msra.gmra.mrb[0].mxu1 %v308_v1 }
 0x27e   :  { %v569_v2 = vpop.f32.mrb[0].mxu0  ;;  %v604_v3 = vpop.f32.mrb[0].mxu1 }
 0x27f   :  { %v570_v4 = vpop.f32.mrb[1].mxu0  ;;  %v605_v5 = vpop.f32.mrb[1].mxu1 }
 0x280   :  { %v571_v6 = vadd.f32 %v570_v4, %v569_v2  ;;  %v606_v7 = vadd.f32 %v605_v5, %v604_v3 }
 0x282   :  { %v511_v8 = vadd.f32 %v606_v7, %v571_v6 }
 0x284   :  { %514 = vst [vmem:[#allocation11] sm:$0x3] %v511_v8 }
 0x285   :  { %734 = shalt.err (!%p731_p8)
}
 0x286   :  { %s735_s22 = scalar_lea.hbm %s896_s8, 32 }
 0x287   :  { %p736_p9 = scmp.ne.s32.totalorder %s896_s8, %s735_s22  ;;  %p739_p10 = scmp.lt.u32.totalorder %s735_s22, %s896_s8 }
 0x289   :  { %p741_p11 = pnand %p739_p10, %p736_p9 }
 0x28b   :  { %744 = shalt.err (!%p741_p11)
}
 0x28c   :  { %524 = dma.vmem_to_hbm [thread:$0]  %s522_s6, 32, %s896_s8, [#allocation8]  }
 0x28d   :  { %749 = dma.done.wait [#allocation8], 32  }
 0x28e   :  { %750 = vsyncadd [#allocation8], 4294967264 }
 0x28f   :  { %528 = vsyncpa [#allocation7], 1 }
 0x290   :  { %529 = vsyncpa [#allocation10], 1 }
 0x291   :  { %530 = vsyncpa [#allocation8], 1 }

</bundles_post_ra>
